<compile_context>
chip_gen: v7x
topology: tpu7x:2x2x1
jax: 0.10.0
libtpu: 0.0.40
codegen_flags: <defaults>
</compile_context>

<pallas_src>
import math
import functools

import jax
import jax.numpy as jnp
from jax.experimental import pallas as pl
from jax.experimental.pallas import tpu as pltpu


# ----------------------------------------------------------------------------
# Buffer setup (mirrors PositionalEncoding.__init__) -- plain JAX glue.
# ----------------------------------------------------------------------------
def make_positional_encoding(d_model: int, max_len: int = 5000,
                             dtype=jnp.float32) -> jnp.ndarray:
    position = jnp.arange(max_len, dtype=jnp.float32)[:, None]               # [max_len, 1]
    div_term = jnp.exp(
        jnp.arange(0, d_model, 2, dtype=jnp.float32) * (-math.log(10000.0) / d_model)
    )                                                                         # [d_model/2]
    pe = jnp.zeros((max_len, d_model), dtype=jnp.float32)
    pe = pe.at[:, 0::2].set(jnp.sin(position * div_term))
    pe = pe.at[:, 1::2].set(jnp.cos(position * div_term))
    # unsqueeze(0).transpose(0, 1) -> [max_len, 1, d_model]; cast once at init
    # so the forward pass never re-converts (and bf16 models halve pe DMA bytes).
    return pe[:, None, :].astype(dtype)


# ----------------------------------------------------------------------------
# In-kernel helpers
# ----------------------------------------------------------------------------
def _bcast_pe(pe_tile, batch_rep: int):
    # 3-D path: batch_rep == 1, pe tile (TS,1,D) broadcasts over B via jnp rules.
    # 2-D (flattened) path: pe tile (TS,D) is repeated over batch along the lane
    # dim via concat (vreg placement when D % 128 == 0 -> essentially free).
    if batch_rep <= 1:
        return pe_tile
    return jnp.concatenate([pe_tile] * batch_rep, axis=-1)


def _add_eval_kernel(x_ref, pe_ref, o_ref, *, batch_rep):
    o_ref[...] = (x_ref[...] + _bcast_pe(pe_ref[...], batch_rep)).astype(o_ref.dtype)


def _add_dropout_prng_kernel(seed_ref, x_ref, pe_ref, o_ref, *,
                             batch_rep, threshold, scale):
    # TPU-only path: in-kernel HW PRNG. Tile id is mixed in as a SECOND seed
    # word (not added to the seed) so adjacent tiles use decorrelated streams.
    pltpu.prng_seed(seed_ref[0], pl.program_id(0))
    y = x_ref[...] + _bcast_pe(pe_ref[...], batch_rep)
    bits = pltpu.prng_random_bits(y.shape)
    masked = bits & jnp.asarray(0xFFFFFF, dtype=bits.dtype)      # 24-bit uniform
    keep = masked >= jnp.asarray(threshold, dtype=bits.dtype)    # drop iff < p*2^24
    o_ref[...] = jnp.where(
        keep, y * jnp.asarray(scale, dtype=y.dtype), jnp.zeros_like(y)
    ).astype(o_ref.dtype)


def _add_dropout_bits_kernel(x_ref, pe_ref, bits_ref, o_ref, *,
                             batch_rep, threshold, scale):
    # Portable fallback: precomputed random bits streamed with the same tiling.
    y = x_ref[...] + _bcast_pe(pe_ref[...], batch_rep)
    bits = bits_ref[...]
    masked = bits & jnp.asarray(0xFFFFFF, dtype=bits.dtype)
    keep = masked >= jnp.asarray(threshold, dtype=bits.dtype)
    o_ref[...] = jnp.where(
        keep, y * jnp.asarray(scale, dtype=y.dtype), jnp.zeros_like(y)
    ).astype(o_ref.dtype)


# ----------------------------------------------------------------------------
# Tile / VMEM sizing (per chip generation, padding-aware)
# ----------------------------------------------------------------------------
@functools.lru_cache(maxsize=None)
def _vmem_config():
    """Return (vmem_limit_bytes, working_set_budget_bytes)."""
    cap = None
    try:
        cap = int(pltpu.get_tpu_info().vmem_capacity_bytes)
    except Exception:
        cap = None
    if cap is not None and cap >= (96 << 20):
        limit = 100 << 20                     # v5e / v6e: 128 MiB physical
    elif cap is not None:
        limit = min(48 << 20, (cap * 3) // 4)  # v7x: 64 MiB physical
    else:
        limit = 48 << 20                       # unknown -> v7x-safe default
    budget = (limit * 4) // 5                  # ~20% headroom for internal scratch
    return limit, budget


def _padded_row_bytes(B: int, D: int, itemsize: int, *, flat: bool,
                      with_bits: bool) -> int:
    """Padded VMEM bytes per seq row of the working set (x + out + pe [+ bits])."""
    lane = lambda n: -(-n // 128) * 128
    if flat:
        x_row = lane(B * D) * itemsize
        pe_row = lane(D) * itemsize
        bits_row = lane(B * D) * 4
    else:
        pack = 32 // itemsize                       # sublane pack of the data dtype
        x_row = (-(-B // pack) * pack) * lane(D) * itemsize
        pe_row = pack * lane(D) * itemsize          # pe middle dim 1 pads to pack
        bits_row = (-(-B // 8) * 8) * lane(D) * 4   # uint32 pack = 8
    total = 2 * x_row + pe_row                      # x in + out
    if with_bits:
        total += bits_row
    return max(1, total)


def _choose_seq_tile(S: int, row_bytes: int, budget_bytes: int,
                     row_align: int) -> int:
    ts = max(1, budget_bytes // (2 * row_bytes))    # double-buffered working set
    ts = min(ts, max(1, (S + 1) // 2))              # >= 2 tiles so both v7x TCs get work
    if ts >= S:
        return int(S)
    if row_align > 1 and ts % row_align != 0:
        ts = (ts // row_align) * row_align
        if ts == 0:
            ts = row_align
    if ts >= S:
        return int(S)
    return int(ts)


# ----------------------------------------------------------------------------
# Wrapper
# ----------------------------------------------------------------------------
def positional_encoding_forward(
    x: jnp.ndarray,
    pe: jnp.ndarray,
    *,
    dropout_p: float = 0.1,
    training: bool = False,
    rng_key=None,
) -> jnp.ndarray:
    """x: [S, B, D]; pe: [max_len, 1, D] (ideally already in model dtype)."""
    S, B, D = x.shape
    dtype = x.dtype
    itemsize = jnp.dtype(dtype).itemsize

    pe_slice = pe[:S]
    if pe_slice.dtype != dtype:
        # Prefer pre-casting at init (make_positional_encoding(dtype=...)).
        pe_slice = pe_slice.astype(dtype)

    pack = 32 // itemsize
    # Small-batch layout: (TS,B,D) blocks pad B up to the sublane pack. When B
    # is small and D is lane-aligned, present lane-dense [S, B*D] slabs instead.
    use_flat = (B < pack) and (D % 128 == 0)

    use_dropout = bool(training) and float(dropout_p) > 0.0
    use_hw_prng = use_dropout and jax.default_backend() == "tpu"
    with_bits_stream = use_dropout and not use_hw_prng

    vmem_limit, budget = _vmem_config()
    row_bytes = _padded_row_bytes(B, D, itemsize, flat=use_flat,
                                  with_bits=with_bits_stream)
    row_align = max(8, pack) if use_flat else 1     # TS is a sublane dim only when flat
    TS = _choose_seq_tile(S, row_bytes, budget, row_align)
    grid = (pl.cdiv(S, TS),)

    if use_flat:
        x_in = x.reshape(S, B * D)                  # contiguous -> free reshape
        pe_in = pe_slice.reshape(S, D)
        x_spec = pl.BlockSpec((TS, B * D), lambda i: (i, 0))
        pe_spec = pl.BlockSpec((TS, D), lambda i: (i, 0))
        bits_spec = pl.BlockSpec((TS, B * D), lambda i: (i, 0))
        bits_shape = (S, B * D)
        out_shape = jax.ShapeDtypeStruct((S, B * D), dtype)
        batch_rep = B
    else:
        x_in = x
        pe_in = pe_slice
        x_spec = pl.BlockSpec((TS, B, D), lambda i: (i, 0, 0))
        pe_spec = pl.BlockSpec((TS, 1, D), lambda i: (i, 0, 0))
        bits_spec = pl.BlockSpec((TS, B, D), lambda i: (i, 0, 0))
        bits_shape = (S, B, D)
        out_shape = jax.ShapeDtypeStruct((S, B, D), dtype)
        batch_rep = 1
    out_spec = x_spec

    compiler_params = pltpu.CompilerParams(
        dimension_semantics=("parallel",),          # shard seq tiles across v7x's 2 TCs
        vmem_limit_bytes=vmem_limit,
    )

    xbytes = S * B * D * itemsize
    pebytes = S * D * itemsize

    if not use_dropout:
        # Eval mode: dropout is identity (matches nn.Dropout in .eval()).
        out = pl.pallas_call(
            functools.partial(_add_eval_kernel, batch_rep=batch_rep),
            grid=grid,
            in_specs=[x_spec, pe_spec],
            out_specs=out_spec,
            out_shape=out_shape,
            compiler_params=compiler_params,
            cost_estimate=pl.CostEstimate(
                flops=S * B * D, transcendentals=0,
                bytes_accessed=2 * xbytes + pebytes),
        )(x_in, pe_in)
        return out.reshape(S, B, D)

    if rng_key is None:
        rng_key = jax.random.PRNGKey(0)
    threshold = int(round(float(dropout_p) * (1 << 24)))   # drop iff bits24 < threshold
    scale = 1.0 / (1.0 - float(dropout_p))

    if use_hw_prng:
        # In-kernel HW PRNG (per-tile seed word) -> no HBM traffic for the mask.
        seed = jax.random.randint(rng_key, (1,), 0, jnp.iinfo(jnp.int32).max,
                                  dtype=jnp.int32)
        out = pl.pallas_call(
            functools.partial(_add_dropout_prng_kernel, batch_rep=batch_rep,
                              threshold=threshold, scale=scale),
            grid=grid,
            in_specs=[pl.BlockSpec(memory_space=pltpu.MemorySpace.SMEM),  # seed
                      x_spec, pe_spec],
            out_specs=out_spec,
            out_shape=out_shape,
            compiler_params=compiler_params,
            cost_estimate=pl.CostEstimate(
                flops=4 * S * B * D, transcendentals=0,
                bytes_accessed=2 * xbytes + pebytes),
        )(seed, x_in, pe_in)
        return out.reshape(S, B, D)

    # Portable fallback (non-TPU / interpret backends): precomputed random bits.
    bits = jax.random.bits(rng_key, bits_shape, dtype=jnp.uint32)
    out = pl.pallas_call(
        functools.partial(_add_dropout_bits_kernel, batch_rep=batch_rep,
                          threshold=threshold, scale=scale),
        grid=grid,
        in_specs=[x_spec, pe_spec, bits_spec],
        out_specs=out_spec,
        out_shape=out_shape,
        compiler_params=compiler_params,
        cost_estimate=pl.CostEstimate(
            flops=4 * S * B * D, transcendentals=0,
            bytes_accessed=2 * xbytes + pebytes + S * B * D * 4),
    )(x_in, pe_in, bits)
    return out.reshape(S, B, D)


# ----------------------------------------------------------------------------
# Demo / self-check
# ----------------------------------------------------------------------------
if __name__ == "__main__":
    root = jax.random.PRNGKey(0)
    kx_base, kdrop = jax.random.split(root)

    configs = [
        (8, 2, 128),   # small batch, lane-aligned D -> flattened [S, B*D] path
        (16, 8, 128),  # standard batch -> (TS, B, D) path, grid of 2 seq tiles
        (8, 2, 32),    # small d_model (<128) -> 3-D fallback path
    ]

    p = 0.1
    for (S, B, D) in configs:
        kx = jax.random.fold_in(kx_base, S * 100000 + B * 1000 + D)
        x = jax.random.normal(kx, (S, B, D), dtype=jnp.float32)
        pe = make_positional_encoding(D, max_len=64, dtype=jnp.float32)
        ref = x + pe[:S]

        # Eval-mode forward (dropout identity) -- verify against pure-JAX reference.
        out = positional_encoding_forward(x, pe, dropout_p=p, training=False)
        out = jax.block_until_ready(out)
        assert out.shape == (S, B, D)
        assert jnp.allclose(out, ref, atol=1e-6), f"eval-mode mismatch at {(S, B, D)}"

        # Training-mode forward (inverted dropout): every element is either 0 or
        # (x + pe) * 1/(1-p).
        out_tr = positional_encoding_forward(
            x, pe, dropout_p=p, training=True, rng_key=kdrop)
        out_tr = jax.block_until_ready(out_tr)
        assert out_tr.shape == (S, B, D)
        expected = ref * (1.0 / (1.0 - p))
        ok = (out_tr == 0.0) | (
            jnp.abs(out_tr - expected) <= 1e-5 * (1.0 + jnp.abs(expected)))
        assert bool(jnp.all(ok)), f"training-mode values invalid at {(S, B, D)}"

    print("KERNEL_OK")
</pallas_src>

<mosaic_0001>
module attributes {stable_mosaic.version = 11 : i64} {
  func.func @_add_eval_kernel(%arg0: i32, %arg1: memref<8x256xf32, #tpu.memory_space<vmem>>, %arg2: memref<8x128xf32, #tpu.memory_space<vmem>>, %arg3: memref<8x256xf32, #tpu.memory_space<vmem>>) attributes {dimension_semantics = [#tpu.dimension_semantics<parallel>], iteration_bounds = array<i64: 1>, scalar_prefetch = 0 : i64, scratch_operands = 0 : i64, tpu.core_type = #tpu.core_type<tc>, window_params = [{transform_indices = @transform_0, window_bounds = array<i64: 8, 256>}, {transform_indices = @transform_1, window_bounds = array<i64: 8, 128>}, {transform_indices = @transform_2, window_bounds = array<i64: 8, 256>}]} {
    %c0 = arith.constant 0 : index
    %c0_0 = arith.constant 0 : index
    %0 = vector.load %arg1[%c0, %c0_0] : memref<8x256xf32, #tpu.memory_space<vmem>>, vector<8x256xf32>
    %c0_1 = arith.constant 0 : index
    %c0_2 = arith.constant 0 : index
    %1 = vector.load %arg2[%c0_1, %c0_2] : memref<8x128xf32, #tpu.memory_space<vmem>>, vector<8x128xf32>
    %2 = tpu.concatenate %1, %1 in 1 : vector<8x128xf32>, vector<8x128xf32> -> vector<8x256xf32>
    %3 = arith.addf %0, %2 : vector<8x256xf32>
    %c0_3 = arith.constant 0 : index
    %c0_4 = arith.constant 0 : index
    %4 = vector.load %arg3[%c0_3, %c0_4] : memref<8x256xf32, #tpu.memory_space<vmem>>, vector<8x256xf32>
    tpu.vector_store %arg3[%c0_3, %c0_4], %3 {strides = array<i32>} : memref<8x256xf32, #tpu.memory_space<vmem>>, vector<8x256xf32>,
    return
  }
  func.func @transform_0(%arg0: i32) -> (i32, i32) {
    %c0_i32 = arith.constant 0 : i32
    %c0_i32_0 = arith.constant 0 : i32
    return %arg0, %c0_i32 : i32, i32
  }
  func.func @transform_1(%arg0: i32) -> (i32, i32) {
    %c0_i32 = arith.constant 0 : i32
    %c0_i32_0 = arith.constant 0 : i32
    return %arg0, %c0_i32 : i32, i32
  }
  func.func @transform_2(%arg0: i32) -> (i32, i32) {
    %c0_i32 = arith.constant 0 : i32
    %c0_i32_0 = arith.constant 0 : i32
    return %arg0, %c0_i32 : i32, i32
  }
}

</mosaic_0001>

<bundles_post_ra>
// kernel: tpu_custom_call.1
= control target key start
LH: loop header
LB: loop body
LE: loop exit
PB: predicated region body
PF: predicated region fallthrough
CT: control target
= control target key end

     0   :  { %7 = vsyncpa [#allocation3], 0  ;;  %s188_s0 = inlined_call_operand.hbm [shape: f32[8,256], index: 0, kind: input, shape index: {}]   ;;  %s189_s1 = inlined_call_operand.hbm [shape: f32[8,128], index: 1, kind: input, shape index: {}]   ;;  %s190_s2 = inlined_call_operand.hbm [shape: f32[8,256], index: 2, kind: output, shape index: {}]  }
   0x1   :  { %8 = vsyncpa [#allocation6], 0 }
   0x2   :  { %9 = vsyncpa [#allocation4], 0  ;;  %s134_s9 = smov [#allocation2]   ;;  %s135_s11 = smov [#allocation5]  }
   0x3   :  { %s16_s10 = sshll.u32 %s134_s9, 4  ;;  %s26_s12 = sshll.u32 %s135_s11, 4  ;;  %s17_s10 = int_to_ptr.vmem [resolvable:$true] %s16_s10  ;;  %s27_s12 = int_to_ptr.vmem [resolvable:$true] %s26_s12 }
   0x4   :  { %s62_s15 = scalar_lea.hbm %s188_s0, 256 }
   0x5   :  { %p63_p0 = scmp.ne.s32.totalorder %s188_s0, %s62_s15  ;;  %p66_p1 = scmp.lt.u32.totalorder %s62_s15, %s188_s0 }
   0x7   :  { %p68_p2 = pnand %p66_p1, %p63_p0 }
   0x9   :  { %71 = shalt.err (!%p68_p2)
}
   0xa   :  { %s72_s20 = scalar_lea.vmem %s17_s10, 256  ;;  %p77_p4 = scmp.lt.s32.totalorder %s17_s10, %s17_s10 }
   0xb   :  { %p73_p3 = scmp.ne.s32.totalorder %s17_s10, %s72_s20  ;;  %p78_p5 = scmp.lt.s32.totalorder %s72_s20, %s72_s20 }
   0xd   :  { %p79_p6 = por %p78_p5, %p77_p4 }
   0xf   :  { %p80_p7 = pnand %p79_p6, %p73_p3 }
  0x11   :  { %83 = shalt.err (!%p80_p7)
}
  0x12   :  { %19 = dma.hbm_to_vmem [thread:$0]  %s188_s0, 256, %s17_s10, [#allocation3]  }
  0x13   :  { %s84_s25 = scalar_lea.hbm %s189_s1, 128 }
  0x14   :  { %p85_p8 = scmp.ne.s32.totalorder %s189_s1, %s84_s25  ;;  %p88_p9 = scmp.lt.u32.totalorder %s84_s25, %s189_s1 }
  0x16   :  { %p90_p10 = pnand %p88_p9, %p85_p8 }
  0x18   :  { %93 = shalt.err (!%p90_p10)
}
  0x19   :  { %s94_s30 = scalar_lea.vmem %s27_s12, 128  ;;  %p99_p12 = scmp.lt.s32.totalorder %s27_s12, %s27_s12 }
  0x1a   :  { %p95_p11 = scmp.ne.s32.totalorder %s27_s12, %s94_s30  ;;  %p100_p13 = scmp.lt.s32.totalorder %s94_s30, %s94_s30 }
  0x1c   :  { %p101_p0 = por %p100_p13, %p99_p12 }
  0x1e   :  { %p102_p1 = pnand %p101_p0, %p95_p11 }
  0x20   :  { %105 = shalt.err (!%p102_p1)
}
  0x21   :  { %29 = dma.hbm_to_vmem [thread:$0]  %s189_s1, 128, %s27_s12, [#allocation6]  }
  0x22   :  { %128 = dma.done.wait [#allocation3], 256  }
  0x23   :  { %129 = vsyncadd [#allocation3], 4294967040 }
  0x24   :  { %130 = dma.done.wait [#allocation6], 128  }
  0x25   :  { %131 = vsyncadd [#allocation6], 4294967168  ;;  %s136_s4 = smov [#allocation7]   ;;  %v36_v0 = vld [vmem:[#allocation2] sm:$0xff]  ;;  %v38_v1 = vld [vmem:[#allocation5] sm:$0xff] }
  0x26   :  { %s49_s5 = sshll.u32 %s136_s4, 4  ;;  %v37_v2 = vld [vmem:[#allocation2 + $0x8] sm:$0xff]  ;;  %v39_v3 = vadd.f32 %v38_v1, %v36_v0  ;;  %s50_s5 = int_to_ptr.vmem [resolvable:$true] %s49_s5 }
  0x27   :  { %v40_v4 = vadd.f32 %v38_v1, %v37_v2  ;;  %s106_s6 = scalar_lea.vmem %s50_s5, 256  ;;  %p111_p3 = scmp.lt.s32.totalorder %s50_s5, %s50_s5 }
  0x28   :  { %41 = vst [vmem:[#allocation7] sm:$0xff] %v39_v3  ;;  %p107_p2 = scmp.ne.s32.totalorder %s50_s5, %s106_s6  ;;  %p112_p4 = scmp.lt.s32.totalorder %s106_s6, %s106_s6 }
  0x29   :  { %42 = vst [vmem:[#allocation7 + $0x8] sm:$0xff] %v40_v4 }
  0x2a   :  { %p113_p5 = por %p112_p4, %p111_p3 }
  0x2c   :  { %p114_p6 = pnand %p113_p5, %p107_p2 }
  0x2e   :  { %117 = shalt.err (!%p114_p6)
}
  0x2f   :  { %s118_s8 = scalar_lea.hbm %s190_s2, 256 }
  0x30   :  { %p119_p7 = scmp.ne.s32.totalorder %s190_s2, %s118_s8  ;;  %p122_p8 = scmp.lt.u32.totalorder %s118_s8, %s190_s2 }
  0x32   :  { %p124_p9 = pnand %p122_p8, %p119_p7 }
  0x34   :  { %127 = shalt.err (!%p124_p9)
}
  0x35   :  { %52 = dma.vmem_to_hbm [thread:$0]  %s50_s5, 256, %s190_s2, [#allocation4]  }
  0x36   :  { %132 = dma.done.wait [#allocation4], 256  }
  0x37   :  { %133 = vsyncadd [#allocation4], 4294967040 }
  0x38   :  { %56 = vsyncpa [#allocation3], 1 }
  0x39   :  { %57 = vsyncpa [#allocation6], 1 }
  0x3a   :  { %58 = vsyncpa [#allocation4], 1 }

</bundles_post_ra>
